<compile_context>
chip_gen: v7x
topology: tpu7x:2x2x1
jax: 0.10.0
libtpu: 0.0.40
codegen_flags: <defaults>
</compile_context>

<pallas_src>
import math
import functools

import jax
import jax.numpy as jnp
from jax import lax
from jax.experimental import pallas as pl
from jax.experimental.pallas import tpu as pltpu


def _agc_loss_kernel(logits_ref, adj_ref, loss_ref,
                     socat_ref, gram_acc, colsum_acc,
                     *, entropy_weight, inv_temperature, num_classes):
    C = num_classes
    C2 = 2 * C
    i = pl.program_id(0)

    # ---- one-time prologue: softmax both logit halves, zero accumulators ----
    @pl.when(i == 0)
    def _init():
        cat = logits_ref[...].astype(jnp.float32)                   # [N, 2C]
        lane = lax.broadcasted_iota(jnp.int32, cat.shape, 1)
        is_o = lane < C                                             # first half = ologits
        m_o = jnp.max(jnp.where(is_o, cat, -jnp.inf), axis=-1, keepdims=True)
        m_p = jnp.max(jnp.where(is_o, -jnp.inf, cat), axis=-1, keepdims=True)
        e = jnp.exp(cat - jnp.where(is_o, m_o, m_p))                # [N, 2C]
        s_o = jnp.sum(jnp.where(is_o, e, 0.0), axis=-1, keepdims=True)
        s_p = jnp.sum(jnp.where(is_o, 0.0, e), axis=-1, keepdims=True)
        socat_ref[...] = e * jnp.where(is_o, 1.0 / s_o, 1.0 / s_p)

        gram_acc[...] = jnp.zeros_like(gram_acc)
        colsum_acc[...] = jnp.zeros_like(colsum_acc)

    # ---- per row-tile: fused neighborhood average + single Gram reduction ----
    adj_t = adj_ref[...].astype(jnp.float32)                        # [TN, N]
    inv_nn = 1.0 / jnp.sum(adj_t, axis=-1, keepdims=True)           # [TN, 1]
    dcat = jnp.dot(adj_t, socat_ref[...],
                   preferred_element_type=jnp.float32) * inv_nn     # [TN, 2C] = [d1 | d2]

    # G = [d1|d2]^T [d1|d2]  ->  d1^T d1, d1^T d2, d2^T d2 in one MXU call
    gram_acc[...] += lax.dot_general(
        dcat, dcat, (((0,), (0,)), ((), ())),
        preferred_element_type=jnp.float32)                         # [2C, 2C]
    colsum_acc[...] += jnp.sum(dcat, axis=0, keepdims=True)         # [1, 2C]

    # ---- epilogue: normalize, CE with identity targets, entropy regularizer ----
    @pl.when(i == pl.num_programs(0) - 1)
    def _finalize():
        G = gram_acc[...]                                           # [2C, 2C]
        r = lax.broadcasted_iota(jnp.int32, (C2, C2), 0)
        c = lax.broadcasted_iota(jnp.int32, (C2, C2), 1)
        Gdiag = jnp.where(r == c, G, 0.0)
        normsq_row = jnp.sum(Gdiag, axis=0, keepdims=True)          # [1, 2C] = ||col_j||^2
        normsq_col = jnp.sum(Gdiag, axis=1, keepdims=True)          # [2C, 1] = ||col_i||^2
        inv_row = 1.0 / jnp.maximum(jnp.sqrt(normsq_row), 1e-12)
        inv_col = 1.0 / jnp.maximum(jnp.sqrt(normsq_col), 1e-12)
        # Gn[i, C+j] = <d1_i, d2_j> / (||d1_i|| ||d2_j||) / T = sim[i, j]
        Gn = G * inv_col * inv_row * inv_temperature                # [2C, 2C]

        sim_mask = (r < C) & (c >= C)                               # top-right block only
        m = jnp.max(jnp.where(sim_mask, Gn, -jnp.inf),
                    axis=1, keepdims=True)                          # [2C, 1]
        e = jnp.where(sim_mask, jnp.exp(Gn - m), 0.0)
        lse = m + jnp.log(jnp.sum(e, axis=1, keepdims=True))        # rows >= C -> -inf (masked below)
        rowsel = lax.broadcasted_iota(jnp.int32, (C2, 1), 0) < C
        sum_lse = jnp.sum(jnp.where(rowsel, lse, 0.0))
        sum_diag = jnp.sum(jnp.where(c == r + C, Gn, 0.0))          # sum_i sim[i, i]
        loss_ce = (sum_lse - sum_diag) * (1.0 / C)

        lane = lax.broadcasted_iota(jnp.int32, (1, C2), 1)
        csum1 = jnp.where(lane < C, colsum_acc[...], 0.0)           # column sums of d1
        p = csum1 * (1.0 / jnp.sum(csum1))
        loss_ne = math.log(C) + jnp.sum(
            jnp.where(lane < C, p * jnp.log(p + 0.01), 0.0))

        loss_ref[...] = jnp.reshape(loss_ce + entropy_weight * loss_ne, (1, 1))


def _pick_row_tile(n, itemsize, min_rows, budget_bytes=8 * 1024 * 1024):
    """Largest row tile dividing n that keeps double-buffered adj row blocks
    under a conservative VMEM budget (safe on v5e/v6e/v7x default scoped VMEM)."""
    candidates = [t for t in (2048, 1024, 512, 256, 128, 64, 32, 16, 8)
                  if t >= min_rows and n % t == 0]
    for t in candidates:
        if 2 * t * n * itemsize <= budget_bytes:
            return t
    return candidates[-1] if candidates else n


def agc_loss(ologits, plogits, adj_eye, entropy_weight=1.0, temperature=1.0,
             row_tile=None):
    """Pallas-TPU AGCLoss forward.  adj_eye may be float32 or bfloat16
    ({0,1} adjacency is exact in bf16 and halves the dominant HBM stream)."""
    N, C = ologits.shape
    assert plogits.shape == (N, C) and adj_eye.shape == (N, N)

    # Layout plumbing only (compute stays in-kernel): concatenate the two logit
    # sets on the class axis so adj goes through the MXU once per row tile.
    logits_cat = jnp.concatenate(
        [ologits.astype(jnp.float32), plogits.astype(jnp.float32)], axis=-1)

    itemsize = jnp.dtype(adj_eye.dtype).itemsize
    min_rows = 8 if itemsize >= 4 else 16          # dtype-dependent sublane tile
    if row_tile is None:
        row_tile = _pick_row_tile(N, itemsize, min_rows)
    assert N % row_tile == 0 and (row_tile % min_rows == 0 or row_tile == N)

    kernel = functools.partial(
        _agc_loss_kernel,
        entropy_weight=float(entropy_weight),
        inv_temperature=1.0 / float(temperature),
        num_classes=C,
    )
    out = pl.pallas_call(
        kernel,
        out_shape=jax.ShapeDtypeStruct((1, 1), jnp.float32),
        grid_spec=pltpu.PrefetchScalarGridSpec(
            num_scalar_prefetch=0,
            grid=(N // row_tile,),
            in_specs=[
                pl.BlockSpec((N, 2 * C), lambda i: (0, 0)),       # resident logits
                pl.BlockSpec((row_tile, N), lambda i: (i, 0)),    # streamed adj rows
            ],
            out_specs=pl.BlockSpec((1, 1), lambda i: (0, 0)),
            scratch_shapes=[
                pltpu.VMEM((N, 2 * C), jnp.float32),      # softmax(o) | softmax(p)
                pltpu.VMEM((2 * C, 2 * C), jnp.float32),  # Gram accumulator
                pltpu.VMEM((1, 2 * C), jnp.float32),      # column sums of [d1|d2]
            ],
        ),
        compiler_params=pltpu.CompilerParams(
            dimension_semantics=("arbitrary",)),          # row axis is a reduction
    )(logits_cat, adj_eye)
    return out[0, 0]


def _agc_loss_ref(ologits, plogits, adj_eye, entropy_weight=1.0, temperature=1.0):
    """Pure-JAX mirror of the PyTorch forward (correctness check)."""
    adj = adj_eye.astype(jnp.float32)
    num_neighbors = jnp.sum(adj, axis=1, keepdims=True)
    so = jax.nn.softmax(ologits, axis=-1)
    sp = jax.nn.softmax(plogits, axis=-1)
    d1 = (adj @ so) / num_neighbors
    d2 = (adj @ sp) / num_neighbors
    d1n = d1 / jnp.maximum(jnp.linalg.norm(d1, axis=0, keepdims=True), 1e-12)
    d2n = d2 / jnp.maximum(jnp.linalg.norm(d2, axis=0, keepdims=True), 1e-12)
    sim = (d1n.T @ d2n) / temperature
    C = sim.shape[0]
    lse = jax.scipy.special.logsumexp(sim, axis=-1)
    loss_ce = jnp.mean(lse - jnp.diag(sim))
    d1s = jnp.sum(d1, axis=0)
    d1s = d1s / jnp.sum(d1s)
    loss_ne = math.log(C) + jnp.sum(d1s * jnp.log(d1s + 0.01))
    return loss_ce + entropy_weight * loss_ne


if __name__ == "__main__":
    N, C = 32, 8   # samples, classes

    key = jax.random.PRNGKey(0)
    k1, k2, k3 = jax.random.split(key, 3)
    ologits = jax.random.normal(k1, (N, C), dtype=jnp.float32)
    plogits = jax.random.normal(k2, (N, C), dtype=jnp.float32)

    # adjacency with self-loops (row sums >= 1)
    bern = (jax.random.uniform(k3, (N, N)) < 0.3).astype(jnp.float32)
    adj_eye = jnp.clip(bern + bern.T + jnp.eye(N, dtype=jnp.float32), 0.0, 1.0)

    # adjacency is {0,1} -> exact in bf16; halves HBM traffic of the big stream.
    # row_tile=16 forces a multi-step grid to exercise the streaming accumulation.
    loss = agc_loss(ologits, plogits, adj_eye.astype(jnp.bfloat16),
                    entropy_weight=1.0, temperature=1.0, row_tile=16)
    loss = jax.block_until_ready(loss)

    ref = _agc_loss_ref(ologits, plogits, adj_eye,
                        entropy_weight=1.0, temperature=1.0)
    assert jnp.allclose(loss, ref, rtol=1e-4, atol=5e-4), (loss, ref)

    print("KERNEL_OK")
</pallas_src>

<mosaic_0001>
module attributes {stable_mosaic.version = 11 : i64} {
  func.func @_agc_loss_kernel(%arg0: i32, %arg1: memref<32x16xf32, #tpu.memory_space<vmem>>, %arg2: memref<16x32xbf16, #tpu.memory_space<vmem>>, %arg3: memref<1x1xf32, #tpu.memory_space<vmem>>, %arg4: memref<32x16xf32, #tpu.memory_space<vmem>>, %arg5: memref<16x16xf32, #tpu.memory_space<vmem>>, %arg6: memref<1x16xf32, #tpu.memory_space<vmem>>) attributes {dimension_semantics = [#tpu.dimension_semantics<arbitrary>], iteration_bounds = array<i64: 2>, scalar_prefetch = 0 : i64, scratch_operands = 3 : i64, tpu.core_type = #tpu.core_type<tc>, window_params = [{pipeline_mode = #tpu.pipeline_mode<synchronous>, transform_indices = @transform_0, window_bounds = array<i64: 32, 16>}, {transform_indices = @transform_1, window_bounds = array<i64: 16, 32>}, {pipeline_mode = #tpu.pipeline_mode<synchronous>, transform_indices = @transform_2, window_bounds = array<i64: 1, 1>}]} {
    %c0_i32 = arith.constant 0 : i32
    %0 = arith.cmpi eq, %arg0, %c0_i32 : i32
    %1 = arith.extui %0 : i1 to i32
    %c0_i32_0 = arith.constant 0 : i32
    %2 = arith.cmpi ne, %1, %c0_i32_0 : i32
    scf.if %2 {
      %c0_17 = arith.constant 0 : index
      %c0_18 = arith.constant 0 : index
      %25 = vector.load %arg1[%c0_17, %c0_18] : memref<32x16xf32, #tpu.memory_space<vmem>>, vector<32x16xf32>
      %26 = tpu.iota {dimensions = array<i32: 1>} : vector<32x16xi32>
      %c8_i32 = arith.constant 8 : i32
      %27 = vector.broadcast %c8_i32 : i32 to vector<32x16xi32>
      %28 = arith.cmpi slt, %26, %27 : vector<32x16xi32>
      %cst_19 = arith.constant 0xFF800000 : f32
      %29 = vector.broadcast %cst_19 : f32 to vector<32x16xf32>
      %30 = arith.select %28, %25, %29 : vector<32x16xi1>, vector<32x16xf32>
      %cst_20 = arith.constant dense<0xFF800000> : vector<32xf32>
      %31 = vector.multi_reduction <maximumf>, %30, %cst_20 [1] : vector<32x16xf32> to vector<32xf32>
      %32 = vector.shape_cast %31 : vector<32xf32> to vector<32x1xf32>
      %cst_21 = arith.constant 0xFF800000 : f32
      %33 = vector.broadcast %cst_21 : f32 to vector<32x16xf32>
      %34 = arith.select %28, %33, %25 : vector<32x16xi1>, vector<32x16xf32>
      %cst_22 = arith.constant dense<0xFF800000> : vector<32xf32>
      %35 = vector.multi_reduction <maximumf>, %34, %cst_22 [1] : vector<32x16xf32> to vector<32xf32>
      %36 = vector.shape_cast %35 : vector<32xf32> to vector<32x1xf32>
      %37 = vector.shape_cast %32 : vector<32x1xf32> to vector<32x1xf32>
      %38 = vector.broadcast %37 : vector<32x1xf32> to vector<32x16xf32>
      %39 = vector.shape_cast %36 : vector<32x1xf32> to vector<32x1xf32>
      %40 = vector.broadcast %39 : vector<32x1xf32> to vector<32x16xf32>
      %41 = arith.select %28, %38, %40 : vector<32x16xi1>, vector<32x16xf32>
      %42 = arith.subf %25, %41 : vector<32x16xf32>
      %43 = math.exp %42 : vector<32x16xf32>
      %cst_23 = arith.constant 0.000000e+00 : f32
      %44 = vector.broadcast %cst_23 : f32 to vector<32x16xf32>
      %45 = arith.select %28, %43, %44 : vector<32x16xi1>, vector<32x16xf32>
      %cst_24 = arith.constant dense<0.000000e+00> : vector<32xf32>
      %46 = vector.multi_reduction <add>, %45, %cst_24 [1] : vector<32x16xf32> to vector<32xf32>
      %47 = vector.shape_cast %46 : vector<32xf32> to vector<32x1xf32>
      %cst_25 = arith.constant 0.000000e+00 : f32
      %48 = vector.broadcast %cst_25 : f32 to vector<32x16xf32>
      %49 = arith.select %28, %48, %43 : vector<32x16xi1>, vector<32x16xf32>
      %cst_26 = arith.constant dense<0.000000e+00> : vector<32xf32>
      %50 = vector.multi_reduction <add>, %49, %cst_26 [1] : vector<32x16xf32> to vector<32xf32>
      %51 = vector.shape_cast %50 : vector<32xf32> to vector<32x1xf32>
      %cst_27 = arith.constant 1.000000e+00 : f32
      %52 = vector.broadcast %cst_27 : f32 to vector<32x1xf32>
      %53 = arith.divf %52, %47 : vector<32x1xf32>
      %cst_28 = arith.constant 1.000000e+00 : f32
      %54 = vector.broadcast %cst_28 : f32 to vector<32x1xf32>
      %55 = arith.divf %54, %51 : vector<32x1xf32>
      %56 = vector.shape_cast %53 : vector<32x1xf32> to vector<32x1xf32>
      %57 = vector.broadcast %56 : vector<32x1xf32> to vector<32x16xf32>
      %58 = vector.shape_cast %55 : vector<32x1xf32> to vector<32x1xf32>
      %59 = vector.broadcast %58 : vector<32x1xf32> to vector<32x16xf32>
      %60 = arith.select %28, %57, %59 : vector<32x16xi1>, vector<32x16xf32>
      %61 = arith.mulf %43, %60 : vector<32x16xf32>
      %c0_29 = arith.constant 0 : index
      %c0_30 = arith.constant 0 : index
      %62 = vector.load %arg4[%c0_29, %c0_30] : memref<32x16xf32, #tpu.memory_space<vmem>>, vector<32x16xf32>
      tpu.vector_store %arg4[%c0_29, %c0_30], %61 {strides = array<i32>} : memref<32x16xf32, #tpu.memory_space<vmem>>, vector<32x16xf32>,
      %cst_31 = arith.constant 0.000000e+00 : f32
      %63 = vector.broadcast %cst_31 : f32 to vector<16x16xf32>
      %c0_32 = arith.constant 0 : index
      %c0_33 = arith.constant 0 : index
      %64 = vector.load %arg5[%c0_32, %c0_33] : memref<16x16xf32, #tpu.memory_space<vmem>>, vector<16x16xf32>
      tpu.vector_store %arg5[%c0_32, %c0_33], %63 {strides = array<i32>} : memref<16x16xf32, #tpu.memory_space<vmem>>, vector<16x16xf32>,
      %cst_34 = arith.constant 0.000000e+00 : f32
      %65 = vector.broadcast %cst_34 : f32 to vector<1x16xf32>
      %c0_35 = arith.constant 0 : index
      %c0_36 = arith.constant 0 : index
      %66 = vector.load %arg6[%c0_35, %c0_36] : memref<1x16xf32, #tpu.memory_space<vmem>>, vector<1x16xf32>
      tpu.vector_store %arg6[%c0_35, %c0_36], %65 {strides = array<i32>} : memref<1x16xf32, #tpu.memory_space<vmem>>, vector<1x16xf32>,
    } else {
    }
    %c0 = arith.constant 0 : index
    %c0_1 = arith.constant 0 : index
    %3 = vector.load %arg2[%c0, %c0_1] : memref<16x32xbf16, #tpu.memory_space<vmem>>, vector<16x32xbf16>
    %4 = arith.extf %3 : vector<16x32xbf16> to vector<16x32xf32>
    %cst = arith.constant dense<0.000000e+00> : vector<16xf32>
    %5 = vector.multi_reduction <add>, %4, %cst [1] : vector<16x32xf32> to vector<16xf32>
    %6 = vector.shape_cast %5 : vector<16xf32> to vector<16x1xf32>
    %cst_2 = arith.constant 1.000000e+00 : f32
    %7 = vector.broadcast %cst_2 : f32 to vector<16x1xf32>
    %8 = arith.divf %7, %6 : vector<16x1xf32>
    %c0_3 = arith.constant 0 : index
    %c0_4 = arith.constant 0 : index
    %9 = vector.load %arg4[%c0_3, %c0_4] : memref<32x16xf32, #tpu.memory_space<vmem>>, vector<32x16xf32>
    %cst_5 = arith.constant dense<0.000000e+00> : vector<16x16xf32>
    %10 = tpu.matmul %4, %9, %cst_5 {dimension_numbers = #tpu.dot_dimension_numbers<[1], [0], [0], [1], [0, 0, 1, 1], [], []>} : vector<16x32xf32>, vector<32x16xf32>, vector<16x16xf32> -> vector<16x16xf32>
    %11 = vector.broadcast %8 : vector<16x1xf32> to vector<16x16xf32>
    %12 = arith.mulf %10, %11 : vector<16x16xf32>
    %c0_6 = arith.constant 0 : index
    %c0_7 = arith.constant 0 : index
    %13 = vector.load %arg5[%c0_6, %c0_7] : memref<16x16xf32, #tpu.memory_space<vmem>>, vector<16x16xf32>
    %cst_8 = arith.constant dense<0.000000e+00> : vector<16x16xf32>
    %14 = tpu.matmul %12, %12, %cst_8 {dimension_numbers = #tpu.dot_dimension_numbers<[0], [0], [1], [1], [0, 1, 1, 1], [], []>} : vector<16x16xf32>, vector<16x16xf32>, vector<16x16xf32> -> vector<16x16xf32>
    %15 = arith.addf %13, %14 : vector<16x16xf32>
    %c0_9 = arith.constant 0 : index
    %c0_10 = arith.constant 0 : index
    %16 = vector.load %arg5[%c0_9, %c0_10] : memref<16x16xf32, #tpu.memory_space<vmem>>, vector<16x16xf32>
    tpu.vector_store %arg5[%c0_9, %c0_10], %15 {strides = array<i32>} : memref<16x16xf32, #tpu.memory_space<vmem>>, vector<16x16xf32>,
    %c0_11 = arith.constant 0 : index
    %c0_12 = arith.constant 0 : index
    %17 = vector.load %arg6[%c0_11, %c0_12] : memref<1x16xf32, #tpu.memory_space<vmem>>, vector<1x16xf32>
    %cst_13 = arith.constant dense<0.000000e+00> : vector<16xf32>
    %18 = vector.multi_reduction <add>, %12, %cst_13 [0] : vector<16x16xf32> to vector<16xf32>
    %19 = vector.shape_cast %18 : vector<16xf32> to vector<1x16xf32>
    %20 = arith.addf %17, %19 : vector<1x16xf32>
    %c0_14 = arith.constant 0 : index
    %c0_15 = arith.constant 0 : index
    %21 = vector.load %arg6[%c0_14, %c0_15] : memref<1x16xf32, #tpu.memory_space<vmem>>, vector<1x16xf32>
    tpu.vector_store %arg6[%c0_14, %c0_15], %20 {strides = array<i32>} : memref<1x16xf32, #tpu.memory_space<vmem>>, vector<1x16xf32>,
    %c1_i32 = arith.constant 1 : i32
    %22 = arith.cmpi eq, %arg0, %c1_i32 : i32
    %23 = arith.extui %22 : i1 to i32
    %c0_i32_16 = arith.constant 0 : i32
    %24 = arith.cmpi ne, %23, %c0_i32_16 : i32
    scf.if %24 {
      %c0_17 = arith.constant 0 : index
      %c0_18 = arith.constant 0 : index
      %25 = vector.load %arg5[%c0_17, %c0_18] : memref<16x16xf32, #tpu.memory_space<vmem>>, vector<16x16xf32>
      %26 = tpu.iota {dimensions = array<i32: 0>} : vector<16x16xi32>
      %27 = tpu.iota {dimensions = array<i32: 1>} : vector<16x16xi32>
      %28 = arith.cmpi eq, %26, %27 : vector<16x16xi32>
      %cst_19 = arith.constant 0.000000e+00 : f32
      %29 = vector.broadcast %cst_19 : f32 to vector<16x16xf32>
      %30 = arith.select %28, %25, %29 : vector<16x16xi1>, vector<16x16xf32>
      %cst_20 = arith.constant dense<0.000000e+00> : vector<16xf32>
      %31 = vector.multi_reduction <add>, %30, %cst_20 [0] : vector<16x16xf32> to vector<16xf32>
      %32 = vector.shape_cast %31 : vector<16xf32> to vector<1x16xf32>
      %cst_21 = arith.constant dense<0.000000e+00> : vector<16xf32>
      %33 = vector.multi_reduction <add>, %30, %cst_21 [1] : vector<16x16xf32> to vector<16xf32>
      %34 = vector.shape_cast %33 : vector<16xf32> to vector<16x1xf32>
      %35 = math.sqrt %32 : vector<1x16xf32>
      %cst_22 = arith.constant 9.99999996E-13 : f32
      %36 = vector.broadcast %cst_22 : f32 to vector<1x16xf32>
      %37 = arith.maximumf %35, %36 : vector<1x16xf32>
      %cst_23 = arith.constant 1.000000e+00 : f32
      %38 = vector.broadcast %cst_23 : f32 to vector<1x16xf32>
      %39 = arith.divf %38, %37 : vector<1x16xf32>
      %40 = math.sqrt %34 : vector<16x1xf32>
      %cst_24 = arith.constant 9.99999996E-13 : f32
      %41 = vector.broadcast %cst_24 : f32 to vector<16x1xf32>
      %42 = arith.maximumf %40, %41 : vector<16x1xf32>
      %cst_25 = arith.constant 1.000000e+00 : f32
      %43 = vector.broadcast %cst_25 : f32 to vector<16x1xf32>
      %44 = arith.divf %43, %42 : vector<16x1xf32>
      %45 = vector.broadcast %44 : vector<16x1xf32> to vector<16x16xf32>
      %46 = arith.mulf %25, %45 : vector<16x16xf32>
      %47 = vector.broadcast %39 : vector<1x16xf32> to vector<16x16xf32>
      %48 = arith.mulf %46, %47 : vector<16x16xf32>
      %cst_26 = arith.constant 1.000000e+00 : f32
      %49 = vector.broadcast %cst_26 : f32 to vector<16x16xf32>
      %50 = arith.mulf %48, %49 : vector<16x16xf32>
      %c8_i32 = arith.constant 8 : i32
      %51 = vector.broadcast %c8_i32 : i32 to vector<16x16xi32>
      %52 = arith.cmpi slt, %26, %51 : vector<16x16xi32>
      %c8_i32_27 = arith.constant 8 : i32
      %53 = vector.broadcast %c8_i32_27 : i32 to vector<16x16xi32>
      %54 = arith.cmpi sge, %27, %53 : vector<16x16xi32>
      %55 = arith.andi %52, %54 : vector<16x16xi1>
      %cst_28 = arith.constant 0xFF800000 : f32
      %56 = vector.broadcast %cst_28 : f32 to vector<16x16xf32>
      %57 = arith.select %55, %50, %56 : vector<16x16xi1>, vector<16x16xf32>
      %cst_29 = arith.constant dense<0xFF800000> : vector<16xf32>
      %58 = vector.multi_reduction <maximumf>, %57, %cst_29 [1] : vector<16x16xf32> to vector<16xf32>
      %59 = vector.shape_cast %58 : vector<16xf32> to vector<16x1xf32>
      %60 = vector.broadcast %59 : vector<16x1xf32> to vector<16x16xf32>
      %61 = arith.subf %50, %60 : vector<16x16xf32>
      %62 = math.exp %61 : vector<16x16xf32>
      %cst_30 = arith.constant 0.000000e+00 : f32
      %63 = vector.broadcast %cst_30 : f32 to vector<16x16xf32>
      %64 = arith.select %55, %62, %63 : vector<16x16xi1>, vector<16x16xf32>
      %cst_31 = arith.constant dense<0.000000e+00> : vector<16xf32>
      %65 = vector.multi_reduction <add>, %64, %cst_31 [1] : vector<16x16xf32> to vector<16xf32>
      %66 = vector.shape_cast %65 : vector<16xf32> to vector<16x1xf32>
      %67 = math.log %66 : vector<16x1xf32>
      %68 = arith.addf %59, %67 : vector<16x1xf32>
      %69 = tpu.iota {dimensions = array<i32: 0>} : vector<16x1xi32>
      %c8_i32_32 = arith.constant 8 : i32
      %70 = vector.broadcast %c8_i32_32 : i32 to vector<16x1xi32>
      %71 = arith.cmpi slt, %69, %70 : vector<16x1xi32>
      %cst_33 = arith.constant 0.000000e+00 : f32
      %72 = vector.broadcast %cst_33 : f32 to vector<16x1xf32>
      %73 = arith.select %71, %68, %72 : vector<16x1xi1>, vector<16x1xf32>
      %74 = vector.shape_cast %73 : vector<16x1xf32> to vector<1x16x1xf32>
      %cst_34 = arith.constant dense<0.000000e+00> : vector<1xf32>
      %75 = vector.multi_reduction <add>, %74, %cst_34 [1, 2] : vector<1x16x1xf32> to vector<1xf32>
      %76 = vector.shape_cast %75 : vector<1xf32> to vector<1x1x1xf32>
      %77 = vector.extract %76[0, 0, 0] : f32 from vector<1x1x1xf32>
      %c8_i32_35 = arith.constant 8 : i32
      %78 = vector.broadcast %c8_i32_35 : i32 to vector<16x16xi32>
      %79 = arith.addi %26, %78 : vector<16x16xi32>
      %80 = arith.cmpi eq, %27, %79 : vector<16x16xi32>
      %cst_36 = arith.constant 0.000000e+00 : f32
      %81 = vector.broadcast %cst_36 : f32 to vector<16x16xf32>
      %82 = arith.select %80, %50, %81 : vector<16x16xi1>, vector<16x16xf32>
      %83 = vector.shape_cast %82 : vector<16x16xf32> to vector<1x16x16xf32>
      %cst_37 = arith.constant dense<0.000000e+00> : vector<1xf32>
      %84 = vector.multi_reduction <add>, %83, %cst_37 [1, 2] : vector<1x16x16xf32> to vector<1xf32>
      %85 = vector.shape_cast %84 : vector<1xf32> to vector<1x1x1xf32>
      %86 = vector.extract %85[0, 0, 0] : f32 from vector<1x1x1xf32>
      %87 = arith.subf %77, %86 : f32
      %cst_38 = arith.constant 1.250000e-01 : f32
      %88 = arith.mulf %87, %cst_38 : f32
      %89 = tpu.iota {dimensions = array<i32: 1>} : vector<1x16xi32>
      %c8_i32_39 = arith.constant 8 : i32
      %90 = vector.broadcast %c8_i32_39 : i32 to vector<1x16xi32>
      %91 = arith.cmpi slt, %89, %90 : vector<1x16xi32>
      %c0_40 = arith.constant 0 : index
      %c0_41 = arith.constant 0 : index
      %92 = vector.load %arg6[%c0_40, %c0_41] : memref<1x16xf32, #tpu.memory_space<vmem>>, vector<1x16xf32>
      %cst_42 = arith.constant 0.000000e+00 : f32
      %93 = vector.broadcast %cst_42 : f32 to vector<1x16xf32>
      %94 = arith.select %91, %92, %93 : vector<1x16xi1>, vector<1x16xf32>
      %95 = vector.shape_cast %94 : vector<1x16xf32> to vector<1x1x16xf32>
      %cst_43 = arith.constant dense<0.000000e+00> : vector<1xf32>
      %96 = vector.multi_reduction <add>, %95, %cst_43 [1, 2] : vector<1x1x16xf32> to vector<1xf32>
      %97 = vector.shape_cast %96 : vector<1xf32> to vector<1x1x1xf32>
      %98 = vector.extract %97[0, 0, 0] : f32 from vector<1x1x1xf32>
      %cst_44 = arith.constant 1.000000e+00 : f32
      %99 = arith.divf %cst_44, %98 : f32
      %100 = vector.broadcast %99 : f32 to vector<1x16xf32>
      %101 = arith.mulf %94, %100 : vector<1x16xf32>
      %c8_i32_45 = arith.constant 8 : i32
      %102 = vector.broadcast %c8_i32_45 : i32 to vector<1x16xi32>
      %103 = arith.cmpi slt, %89, %102 : vector<1x16xi32>
      %cst_46 = arith.constant 0.00999999977 : f32
      %104 = vector.broadcast %cst_46 : f32 to vector<1x16xf32>
      %105 = arith.addf %101, %104 : vector<1x16xf32>
      %106 = math.log %105 : vector<1x16xf32>
      %107 = arith.mulf %101, %106 : vector<1x16xf32>
      %cst_47 = arith.constant 0.000000e+00 : f32
      %108 = vector.broadcast %cst_47 : f32 to vector<1x16xf32>
      %109 = arith.select %103, %107, %108 : vector<1x16xi1>, vector<1x16xf32>
      %110 = vector.shape_cast %109 : vector<1x16xf32> to vector<1x1x16xf32>
      %cst_48 = arith.constant dense<0.000000e+00> : vector<1xf32>
      %111 = vector.multi_reduction <add>, %110, %cst_48 [1, 2] : vector<1x1x16xf32> to vector<1xf32>
      %112 = vector.shape_cast %111 : vector<1xf32> to vector<1x1x1xf32>
      %113 = vector.extract %112[0, 0, 0] : f32 from vector<1x1x1xf32>
      %cst_49 = arith.constant 2.07944155 : f32
      %114 = arith.addf %cst_49, %113 : f32
      %cst_50 = arith.constant 1.000000e+00 : f32
      %115 = arith.mulf %cst_50, %114 : f32
      %116 = arith.addf %88, %115 : f32
      %117 = vector.broadcast %116 : f32 to vector<1x1xf32>
      %c0_51 = arith.constant 0 : index
      %c0_52 = arith.constant 0 : index
      %118 = vector.load %arg3[%c0_51, %c0_52] : memref<1x1xf32, #tpu.memory_space<vmem>>, vector<1x1xf32>
      tpu.vector_store %arg3[%c0_51, %c0_52], %117 {strides = array<i32>} : memref<1x1xf32, #tpu.memory_space<vmem>>, vector<1x1xf32>,
    } else {
    }
    return
  }
  func.func @transform_0(%arg0: i32) -> (i32, i32) {
    %c0_i32 = arith.constant 0 : i32
    %c0_i32_0 = arith.constant 0 : i32
    %c0_i32_1 = arith.constant 0 : i32
    return %c0_i32, %c0_i32_0 : i32, i32
  }
  func.func @transform_1(%arg0: i32) -> (i32, i32) {
    %c0_i32 = arith.constant 0 : i32
    %c0_i32_0 = arith.constant 0 : i32
    return %arg0, %c0_i32 : i32, i32
  }
  func.func @transform_2(%arg0: i32) -> (i32, i32) {
    %c0_i32 = arith.constant 0 : i32
    %c0_i32_0 = arith.constant 0 : i32
    %c0_i32_1 = arith.constant 0 : i32
    return %c0_i32, %c0_i32_0 : i32, i32
  }
}

</mosaic_0001>

<bundles_post_ra>
// kernel: tpu_custom_call.1
= control target key start
LH: loop header
LB: loop body
LE: loop exit
PB: predicated region body
PF: predicated region fallthrough
CT: control target
= control target key end

     0   :  { %7 = vsyncpa [#allocation6], 0  ;;  %s894_s9 = smov 0   ;;  %s1055_s0 = inlined_call_operand.vmem [shape: f32[32,16], index: 0, kind: input, shape index: {}]   ;;  %s1056_s1 = inlined_call_operand.vmem [shape: bf16[32,32], index: 1, kind: input, shape index: {}]   ;;  %s1057_s2 = inlined_call_operand.hbm [shape: f32[1,1], index: 2, kind: output, shape index: {}]  }
   0x1 LB: > { %s900_s10 = sadd.s32 4294967295, %s875_s9   ;;  %p707_p0 = scmp.ge.s32.totalorder %s875_s9, 1  ;;  %s875_s9 = sphi %s894_s9, %s13_s9  }
   0x2   : > { %p109_p1 = scmp.lt.s32.totalorder %s875_s9, 3 }
   0x4   : > { %p110_p2 = pnand %p707_p0, %p109_p1 }
   0x5   : > { %s708_s11 = sshll.u32 (!%p110_p2), %s900_s10, 1  ;;  %p710_p4 = scmp.ne.s32.totalorder (!%p110_p2), %s900_s10, 0 }
   0x6   : > { %113 = sbr.rel (%p110_p2) target bundleno = 1965 (0x7ad), region = 28  ;;  %p127_p3 = scmp.lt.s32.totalorder (!%p110_p2), %s708_s11, 3 }
   0xd   : > { %s1059_s11 = smov (!%p127_p3, %s708_s11), 3  ;;  %135 = sbr.rel (%p710_p4) target bundleno = 359 (0x167), region = 32 }
   0xe   : > { %s709_s12 = sshll.u32 %s1059_s11, 2  ;;  %v140_v0 = vlaneseq (!%p710_p4)  ;;  %vm147_vm0 = vcmask (!%p710_p4), 130048   ;;  %vm254_vm1 = vcmask (!%p710_p4), 122880   ;;  %v138_v1 = vld [vmem:[%s1055_s0 + $0x10] sm:$0xff] (!%p710_p4)  ;;  %v877_v2 = vmov (!%p710_p4), 0.0   ;;  %v136_v4 = vld [vmem:[%s1055_s0] sm:$0xff] (!%p710_p4) }
   0xf   : > { %s908_s15 = scalar_lea.vmem %s1056_s1, %s709_s12  ;;  %252 = vst.msk [vmem:[#allocation3] sm:$0xff] (!%p710_p4), %vm147_vm0, %v877_v2  ;;  %253 = vst.msk [vmem:[#allocation3 + $0x8] sm:$0xff] (!%p710_p4), %vm147_vm0, %v877_v2  ;;  %v139_v5 = vld [vmem:[%s1055_s0 + $0x18] sm:$0xff] (!%p710_p4)  ;;  %v137_v6 = vld [vmem:[%s1055_s0 + $0x8] sm:$0xff] (!%p710_p4) }
  0x10   : > { %255 = vst.msk [vmem:[#allocation4] sm:$0x1] (!%p710_p4), %vm254_vm1, %v877_v2  ;;  %v916_v3 = vand.u32 (!%p710_p4), 127, %v140_v0 }
  0x12   : > { %vm142_vm2 = vcmp.lt.s32.totalorder (!%p710_p4), %v916_v3, 8 }
  0x13   : > { %v145_v7 = vsel (!%p710_p4), %vm142_vm2, %v138_v1, -inf  ;;  %v143_v8 = vsel (!%p710_p4), %vm142_vm2, %v136_v4, -inf  ;;  %v146_v9 = vsel (!%p710_p4), %vm142_vm2, %v139_v5, -inf  ;;  %v144_v10 = vsel (!%p710_p4), %vm142_vm2, %v137_v6, -inf }
  0x14   : > { %v154_v11 = vsel %vm147_vm0, %v145_v7, -inf  ;;  %v148_v12 = vsel %vm147_vm0, %v143_v8, -inf  ;;  %v157_v13 = vsel %vm147_vm0, %v146_v9, -inf  ;;  %v151_v14 = vsel %vm147_vm0, %v144_v10, -inf }
  0x15   : > { %155 = vmax.xlane.f32.xlu1 %v154_v11  ;;  %149 = vmax.xlane.f32.xlu0 %v148_v12  ;;  %v161_v15 = vsel %vm142_vm2, -inf, %v137_v6  ;;  %v160_v16 = vsel %vm142_vm2, -inf, %v136_v4  ;;  %v163_v19 = vsel %vm142_vm2, -inf, %v139_v5  ;;  %v162_v20 = vsel %vm142_vm2, -inf, %v138_v1 }
  0x16   : > { %v167_v17 = vsel %vm147_vm0, %v161_v15, -inf  ;;  %v164_v18 = vsel %vm147_vm0, %v160_v16, -inf  ;;  %v173_v21 = vsel %vm147_vm0, %v163_v19, -inf  ;;  %v170_v22 = vsel %vm147_vm0, %v162_v20, -inf }
  0x19   : > { %158 = vmax.xlane.f32.xlu1 %v157_v13  ;;  %152 = vmax.xlane.f32.xlu0 %v151_v14 }
  0x1d   : > { %168 = vmax.xlane.f32.xlu1 %v167_v17  ;;  %165 = vmax.xlane.f32.xlu0 %v164_v18 }
  0x21   : > { %174 = vmax.xlane.f32.xlu1 %v173_v21  ;;  %171 = vmax.xlane.f32.xlu0 %v170_v22 }
  0xa2   : > { %v156_v23 = vpop.xlane.xlu1 %155  ;;  %v150_v24 = vpop.xlane.xlu0 %149 }
  0xa6   : > { %v159_v25 = vpop.xlane.xlu1 %158  ;;  %v153_v26 = vpop.xlane.xlu0 %152 }
  0xaa   : > { %v169_v27 = vpop.xlane.xlu1 %168  ;;  %v166_v28 = vpop.xlane.xlu0 %165 }
  0xab   : > { %v177_v29 = vsel %vm142_vm2, %v153_v26, %v169_v27  ;;  %v176_v30 = vsel %vm142_vm2, %v150_v24, %v166_v28 }
  0xac   : > { %v181_v31 = vsub.f32 %v137_v6, %v177_v29  ;;  %v180_v32 = vsub.f32 %v136_v4, %v176_v30 }
  0xae   : > { %v186_v33 = vmul.f32 1.442695, %v181_v31  ;;  %v184_v34 = vmul.f32 1.442695, %v180_v32  ;;  %v175_v35 = vpop.xlane.xlu1 %174  ;;  %v172_v36 = vpop.xlane.xlu0 %171 }
  0xaf   : > { %v179_v37 = vsel %vm142_vm2, %v159_v25, %v175_v35  ;;  %v178_v38 = vsel %vm142_vm2, %v156_v23, %v172_v36 }
  0xb0   : > { %791 = vpow2.f32 %v186_v33  ;;  %v183_v39 = vsub.f32 %v139_v5, %v179_v37  ;;  %v182_v40 = vsub.f32 %v138_v1, %v178_v38 }
  0xb1   : > { %793 = vpow2.f32 %v184_v34 }
  0xb2   : > { %v190_v41 = vmul.f32 1.442695, %v183_v39  ;;  %v188_v42 = vmul.f32 1.442695, %v182_v40 }
  0xb4   : > { %795 = vpow2.f32 %v190_v41 }
  0xb5   : > { %797 = vpow2.f32 %v188_v42 }
  0xba   : > { %v792_v43 = vpop.eup %791 }
  0xbb   : > { %v794_v44 = vpop.eup %793  ;;  %v193_v45 = vsel %vm142_vm2, %v792_v43, 0.0  ;;  %v209_v55 = vsel %vm142_vm2, 0.0, %v792_v43 }
  0xbc   : > { %v199_v46 = vsel %vm147_vm0, %v193_v45, 0.0  ;;  %v192_v47 = vsel %vm142_vm2, %v794_v44, 0.0  ;;  %v208_v56 = vsel %vm142_vm2, 0.0, %v794_v44  ;;  %v215_v57 = vsel %vm147_vm0, %v209_v55, 0.0 }
  0xbd   : > { %200 = vadd.xlane.f32.xlu1 %v199_v46  ;;  %v196_v48 = vsel %vm147_vm0, %v192_v47, 0.0  ;;  %v212_v58 = vsel %vm147_vm0, %v208_v56, 0.0 }
  0xbe   : > { %v796_v49 = vpop.eup %795  ;;  %197 = vadd.xlane.f32.xlu0 %v196_v48 }
  0xbf   : > { %v798_v50 = vpop.eup %797  ;;  %v195_v51 = vsel %vm142_vm2, %v796_v49, 0.0  ;;  %v211_v59 = vsel %vm142_vm2, 0.0, %v796_v49 }
  0xc0   : > { %v205_v52 = vsel %vm147_vm0, %v195_v51, 0.0  ;;  %v194_v53 = vsel %vm142_vm2, %v798_v50, 0.0  ;;  %v210_v60 = vsel %vm142_vm2, 0.0, %v798_v50  ;;  %v221_v61 = vsel %vm147_vm0, %v211_v59, 0.0 }
  0xc1   : > { %206 = vadd.xlane.f32.xlu1 %v205_v52  ;;  %v202_v54 = vsel %vm147_vm0, %v194_v53, 0.0  ;;  %v218_v62 = vsel %vm147_vm0, %v210_v60, 0.0 }
  0xc2   : > { %203 = vadd.xlane.f32.xlu0 %v202_v54 }
  0xc5   : > { %216 = vadd.xlane.f32.xlu1 %v215_v57 }
  0xc6   : > { %213 = vadd.xlane.f32.xlu0 %v212_v58 }
  0xc9   : > { %222 = vadd.xlane.f32.xlu1 %v221_v61 }
  0xca   : > { %219 = vadd.xlane.f32.xlu0 %v218_v62 }
 0x14a   : > { %v201_v63 = vpop.xlane.xlu1 %200 }
 0x14b   : > { %v198_v0 = vpop.xlane.xlu0 %197  ;;  %799 = vrcp.f32 %v201_v63 }
 0x14c   : > { %801 = vrcp.f32 %v198_v0 }
 0x14e   : > { %v207_v1 = vpop.xlane.xlu1 %206 }
 0x14f   : > { %v204_v2 = vpop.xlane.xlu0 %203 }
 0x152   : > { %v217_v4 = vpop.xlane.xlu1 %216 }
 0x153   : > { %803 = vrcp.f32 %v217_v4  ;;  %v214_v5 = vpop.xlane.xlu0 %213 }
 0x154   : > { %805 = vrcp.f32 %v214_v5 }
 0x155   : > { %807 = vrcp.f32 %v207_v1  ;;  %v800_v8 = vpop.eup %799 }
 0x156   : > { %809 = vrcp.f32 %v204_v2  ;;  %v223_v6 = vpop.xlane.xlu1 %222  ;;  %v802_v9 = vpop.eup %801 }
 0x157   : > { %811 = vrcp.f32 %v223_v6  ;;  %v220_v7 = vpop.xlane.xlu0 %219 }
 0x158   : > { %813 = vrcp.f32 %v220_v7 }
 0x15d   : > { %v804_v10 = vpop.eup %803 }
 0x15e   : > { %v806_v11 = vpop.eup %805  ;;  %v241_v12 = vsel %vm142_vm2, %v800_v8, %v804_v10 }
 0x15f   : > { %v808_v13 = vpop.eup %807  ;;  %v245_v14 = vmul.f32 %v792_v43, %v241_v12  ;;  %v240_v15 = vsel %vm142_vm2, %v802_v9, %v806_v11 }
 0x160   : > { %v810_v16 = vpop.eup %809  ;;  %v244_v17 = vmul.f32 %v794_v44, %v240_v15 }
 0x161   : > { %v812_v18 = vpop.eup %811  ;;  %249 = vst.msk [vmem:[#allocation2 + $0x8] sm:$0xff] %vm147_vm0, %v245_v14 }
 0x162   : > { %v814_v19 = vpop.eup %813  ;;  %248 = vst.msk [vmem:[#allocation2] sm:$0xff] %vm147_vm0, %v244_v17  ;;  %v243_v20 = vsel %vm142_vm2, %v808_v13, %v812_v18 }
 0x163   : > { %v247_v21 = vmul.f32 %v796_v49, %v243_v20  ;;  %v242_v22 = vsel %vm142_vm2, %v810_v16, %v814_v19 }
 0x164   : > { %v246_v23 = vmul.f32 %v798_v50, %v242_v22 }
 0x165   : > { %251 = vst.msk [vmem:[#allocation2 + $0x18] sm:$0xff] %vm147_vm0, %v247_v21 }
 0x166   : > { %250 = vst.msk [vmem:[#allocation2 + $0x10] sm:$0xff] %vm147_vm0, %v246_v23 }
 0x167 PF: > { %v721_v29 = vld [vmem:[%s908_s15] sm:$0xff]   ;;  %vm260_vm3 = vcmask 261120   ;;  %vm392_vm4 = vcmask 130048   ;;  %vm489_vm5 = vcmask 122880   ;;  %p715_p5 = scmp.ne.s32.totalorder %s900_s10, 1 }
 0x168   : > { %v272_v25 = vld [vmem:[#allocation2 + $0x8] sm:$0xff]  ;;  %v722_v31 = vunpack.c.l.bf16 %v721_v29  ;;  %v723_v3 = vunpack.c.h.bf16 %v721_v29  ;;  %v497_v62 = vlaneseq (!%p715_p5)  ;;  %vm588_vm2 = vcmask (!%p715_p5), 7168  }
 0x169   : > { %v271_v24 = vld [vmem:[#allocation2] sm:$0xff]  ;;  %v359_v56 = vld [vmem:[#allocation3 + $0x8] sm:$0xff] }
 0x16a   : > { %v752_v27 = vpack.c.bf16 %v272_v25, %v271_v24  ;;  %742 = vmatprep.mubr.msk.f32.mxu0 %vm260_vm3, %v722_v31  ;;  %v261_v32 = vsel %vm260_vm3, %v722_v31, 0.0  ;;  %v264_v33 = vsel %vm260_vm3, %v723_v3, 0.0  ;;  %v478_v51 = vld [vmem:[#allocation4] sm:$0x1]  ;;  %v358_v57 = vld [vmem:[#allocation3] sm:$0xff]  ;;  %v498_v0 = vshrl.u32 (!%p715_p5), %v497_v62, 7 }
 0x16b   : > { %262 = vadd.xlane.f32.xlu0 %v261_v32  ;;  %v1005_v1 = vand.u32 (!%p715_p5), 127, %v497_v62 }
 0x16c   : > { %v274_v28 = vld [vmem:[#allocation2 + $0x18] sm:$0xff]  ;;  %753 = vmatprep.subr.bf16.mxu0 %v752_v27  ;;  %v499_v2 = vadd.s32 (!%p715_p5), 8, %v498_v0 }
 0x16d   : > { %v273_v26 = vld [vmem:[#allocation2 + $0x10] sm:$0xff]  ;;  %755 = vmatpush3.bf16.msra.mxu0 %v752_v27  ;;  %vm502_vm6 = vcmp.eq.s32.totalorder (!%p715_p5), %v498_v0, %v1005_v1  ;;  %vm555_vm14 = vcmp.ge.s32.totalorder (!%p715_p5), %v1005_v1, 8  ;;  %vm620_vm1 = vcmp.lt.s32.totalorder (!%p715_p5), %v1005_v1, 8 }
 0x16e   : > { %v756_v30 = vpack.c.bf16 %v274_v28, %v273_v26  ;;  %vm503_vm7 = vcmp.eq.s32.totalorder (!%p715_p5), %v499_v2, %v1005_v1  ;;  %vm602_vm15 = vcmp.eq.s32.totalorder (!%p715_p5), %v1005_v1, %v499_v2 }
 0x16f   : > { %265 = vadd.xlane.f32.xlu0 %v264_v33 }
 0x170   : > { %757 = vmatprep.subr.bf16.mxu0 %v756_v30 }
 0x171   : > { %759 = vmatpush3.bf16.msra.mxu0 %v756_v30 }
 0x174   : > { %743 = vmatmul.mubr.msk.f32.vlgmr.msra.gmra.mrb[0].mxu0 %vm260_vm3, %v723_v3  ;;  %vm656_vm3 = vcmask (!%p715_p5), 0  }
 0x1f8   : > { %v263_v34 = vpop.xlane.xlu0 %262 }
 0x1fc   : > { %v266_v35 = vpop.xlane.xlu0 %265 }
 0x1fd   : > { %815 = vrcp.f32 %v266_v35 }
 0x1fe   : > { %817 = vrcp.f32 %v263_v34 }
 0x207   : > { %v816_v36 = vpop.eup %815 }
 0x208   : > { %v818_v37 = vpop.eup %817 }
 0x247   : > { %v744_v38 = vpop.f32.mrb[0].mxu0 }
 0x248   : > { %v357_v39 = vmul.f32 %v816_v36, %v744_v38  ;;  %v347_v40 = vpop.f32.mrb[1].mxu0 }
 0x249   : > { %v356_v41 = vmul.f32 %v818_v37, %v347_v40  ;;  %v601_v37 = vadd.s32 (!%p715_p5), 8, %v499_v2 }
 0x24a   : > { %v480_v42 = vsel %vm392_vm4, %v357_v39, 0.0 }
 0x24b   : > { %v479_v43 = vsel %vm392_vm4, %v356_v41, 0.0  ;;  %360 = vxpose.xlu1.b32.start [1/2] (short) (narrow) %v356_v41, 16  ;;  %v760_v44 = vpack.c.bf16 %v357_v39, %v356_v41  ;;  %vm603_vm0 = vcmp.eq.s32.totalorder (!%p715_p5), %v1005_v1, %v601_v37 }
 0x24c   : > { %v481_v45 = vadd.f32 %v480_v42, %v479_v43 }
 0x24d   : > { %761 = vmatprep.subr.bf16.mxu1 %v760_v44 }
 0x24e   : > { %v482_v46 = vrot.slane %v481_v45, 4  ;;  %763 = vmatpush3.bf16.msra.mxu1 %v760_v44 }
 0x24f   : > { %361 = vxpose.xlu1.b32.end [2/2] (short) (narrow) %v357_v39, 16 }
 0x250   : > { %v483_v47 = vadd.f32 %v482_v46, %v481_v45 }
 0x252   : > { %v484_v48 = vrot.slane %v483_v47, 2 }
 0x254   : > { %v485_v49 = vadd.f32 %v484_v48, %v483_v47 }
 0x256   : > { %v486_v50 = vrot.slane %v485_v49, 1 }
 0x258   : > { %v487_v52 = vadd.f32 %v486_v50, %v485_v49 }
 0x25a   : > { %v488_v53 = vadd.f32 %v487_v52, %v478_v51 }
 0x25c   : > { %490 = vst.msk [vmem:[#allocation4] sm:$0x1] %vm489_vm5, %v488_v53 }
 0x2cb   : > { %v376_v54 = vpop.trf.xlu1 }
 0x2cc   : > { %749 = vmatprep.mubr.msk.f32.mxu1 %vm392_vm4, %v376_v54 }
 0x2cf   : > { %v377_v55 = vpop.trf.xlu1 }
 0x2d0   : > { %750 = vmatmul.mubr.msk.f32.vlgmr.msra.gmra.mrb[0].mxu1 %vm392_vm4, %v377_v55 }
 0x3a1   : > { %494 = sbr.rel (%p715_p5) target bundleno = 1940 (0x794), region = 36 }
 0x3a3   : > { %v751_v58 = vpop.f32.mrb[0].mxu1 }
 0x3a4   : > { %v475_v59 = vadd.f32 %v751_v58, %v359_v56  ;;  %v465_v60 = vpop.f32.mrb[1].mxu1 }
 0x3a5   : > { %v474_v61 = vadd.f32 %v465_v60, %v358_v57 }
 0x3a6   : > { %477 = vst.msk [vmem:[#allocation3 + $0x8] sm:$0xff] %vm392_vm4, %v475_v59  ;;  %v621_v59 = vld [vmem:[#allocation4] sm:$0x1] (!%p715_p5) }
 0x3a7   : > { %476 = vst.msk [vmem:[#allocation3] sm:$0xff] %vm392_vm4, %v474_v61  ;;  %v622_v61 = vsel (!%p715_p5), %vm620_vm1, %v621_v59, 0.0 }
 0x3ad   : > { %v496_v4 = vld [vmem:[#allocation3 + $0x8] sm:$0xff] }
 0x3ae   : > { %v495_v63 = vld [vmem:[#allocation3] sm:$0xff]  ;;  %v505_v7 = vsel %vm503_vm7, %v496_v4, 0.0 }
 0x3af   : > { %v504_v5 = vsel %vm502_vm6, %v495_v63, 0.0  ;;  %v507_v8 = vsel %vm392_vm4, %v505_v7, 0.0 }
 0x3b0   : > { %v506_v6 = vsel %vm392_vm4, %v504_v5, 0.0  ;;  %517 = vadd.xlane.f32.xlu1 %v507_v8 }
 0x3b1   : > { %515 = vadd.xlane.f32.xlu0 %v506_v6  ;;  %v508_v9 = vadd.f32 %v507_v8, %v506_v6 }
 0x3b3   : > { %v509_v10 = vrot.slane %v508_v9, 4 }
 0x3b5   : > { %v510_v11 = vadd.f32 %v509_v10, %v508_v9 }
 0x3b7   : > { %v511_v12 = vrot.slane %v510_v11, 2 }
 0x3b9   : > { %v512_v13 = vadd.f32 %v511_v12, %v510_v11 }
 0x3bb   : > { %v513_v14 = vrot.slane %v512_v13, 1 }
 0x3bd   : > { %v514_v15 = vadd.f32 %v513_v14, %v512_v13 }
 0x3bf   : > { %819 = vrsqrt.f32 %v514_v15  ;;  %vm521_vm8 = vcmp.eq.f32.partialorder %v514_v15, inf  ;;  %v524_v20 = vand.u32 2147483648, %v514_v15  ;;  %vm523_vm9 = vcmp.eq.f32.partialorder %v514_v15, 0.0 }
 0x3c9   : > { %v820_v16 = vpop.eup %819 }
 0x3ca   : > { %v520_v19 = vmul.f32 %v820_v16, %v514_v15 }
 0x3cc   : > { %v522_v21 = vsel %vm521_vm8, %v514_v15, %v520_v19 }
 0x3cd   : > { %v525_v22 = vsel %vm523_vm9, %v524_v20, %v522_v21 }
 0x3ce   : > { %v526_v25 = vmax.f32 %v525_v22, 1e-12 }
 0x43d   : > { %v518_v18 = vpop.xlane.xlu1 %517 }
 0x43e   : > { %v516_v17 = vpop.xlane.xlu0 %515  ;;  %vm538_vm11 = vcmp.eq.f32.partialorder %v518_v18, inf  ;;  %v541_v28 = vand.u32 2147483648, %v518_v18  ;;  %vm540_vm13 = vcmp.eq.f32.partialorder %v518_v18, 0.0 }
 0x43f   : > { %821 = vrsqrt.f32 %v516_v17  ;;  %vm531_vm10 = vcmp.eq.f32.partialorder %v516_v17, inf  ;;  %v534_v27 = vand.u32 2147483648, %v516_v17  ;;  %vm533_vm12 = vcmp.eq.f32.partialorder %v516_v17, 0.0 }
 0x440   : > { %823 = vrsqrt.f32 %v518_v18 }
 0x441   : > { %825 = vrcp.f32 %v526_v25 }
 0x449   : > { %v822_v23 = vpop.eup %821 }
 0x44a   : > { %v530_v24 = vmul.f32 %v822_v23, %v516_v17  ;;  %v824_v26 = vpop.eup %823 }
 0x44b   : > { %v537_v30 = vmul.f32 %v824_v26, %v518_v18  ;;  %v826_v35 = vpop.eup %825 }
 0x44c   : > { %v532_v29 = vsel %vm531_vm10, %v516_v17, %v530_v24 }
 0x44d   : > { %v535_v31 = vsel %vm533_vm12, %v534_v27, %v532_v29  ;;  %v539_v32 = vsel %vm538_vm11, %v518_v18, %v537_v30 }
 0x44e   : > { %v543_v3 = vmax.f32 %v535_v31, 1e-12  ;;  %v542_v33 = vsel %vm540_vm13, %v541_v28, %v539_v32 }
 0x44f   : > { %v544_v34 = vmax.f32 %v542_v33, 1e-12 }
 0x450   : > { %827 = vrcp.f32 %v543_v3 }
 0x451   : > { %829 = vrcp.f32 %v544_v34 }
 0x45a   : > { %v828_v36 = vpop.eup %827 }
 0x45b   : > { %v549_v38 = vmul.f32 %v828_v36, %v495_v63  ;;  %v830_v39 = vpop.eup %829  ;;  %v623_v63 = vsel %vm489_vm5, %v622_v61, 0.0 }
 0x45c   : > { %v550_v41 = vmul.f32 %v830_v39, %v496_v4 }
 0x45d   : > { %v551_v40 = vmul.f32 %v826_v35, %v549_v38 }
 0x45e   : > { %v552_v43 = vmul.f32 %v826_v35, %v550_v41 }
 0x45f   : > { %v558_v42 = vsel %vm555_vm14, %v551_v40, -inf  ;;  %v604_v44 = vsel %vm602_vm15, %v551_v40, 0.0 }
 0x460   : > { %v560_v45 = vsel %vm392_vm4, %v558_v42, -inf  ;;  %v605_v46 = vsel %vm603_vm0, %v552_v43, 0.0  ;;  %v606_v47 = vsel %vm392_vm4, %v604_v44, 0.0 }
 0x461   : > { %561 = vmax.xlane.f32.xlu0 %v560_v45  ;;  %v607_v48 = vsel %vm392_vm4, %v605_v46, 0.0 }
 0x462   : > { %v608_v49 = vadd.f32 %v607_v48, %v606_v47 }
 0x4ee   : > { %v562_v50 = vpop.xlane.xlu0 %561 }
 0x4ef   : > { %v566_v51 = vsub.f32 %v551_v40, %v562_v50 }
 0x4f1   : > { %v568_v52 = vmul.f32 1.442695, %v566_v51 }
 0x4f3   : > { %831 = vpow2.f32 %v568_v52 }
 0x4fd   : > { %v832_v53 = vpop.eup %831 }
 0x4fe   : > { %v572_v54 = vsel %vm555_vm14, %v832_v53, 0.0 }
 0x4ff   : > { %v574_v55 = vsel %vm392_vm4, %v572_v54, 0.0 }
 0x500   : > { %575 = vadd.xlane.f32.xlu1 %v574_v55 }
 0x504   : > { %609 = vadd.xlane.f32.xlu1 %v608_v49 }
 0x58d   : > { %v576_v56 = vpop.xlane.xlu1 %575 }
 0x58e   : > { %833 = vlog2.f32 %v576_v56 }
 0x591   : > { %v610_v0 = vpop.xlane.xlu1 %609 }
 0x592   : > { %v611_v2 = vrot.slane %v610_v0, 4 }
 0x594   : > { %v612_v4 = vadd.f32 %v611_v2, %v610_v0 }
 0x596   : > { %v613_v5 = vrot.slane %v612_v4, 2 }
 0x598   : > { %v834_v57 = vpop.eup %833  ;;  %v614_v10 = vadd.f32 %v613_v5, %v612_v4 }
 0x599   : > { %v581_v58 = vmul.f32 0.6931472, %v834_v57 }
 0x59a   : > { %v615_v15 = vrot.slane %v614_v10, 1 }
 0x59b   : > { %v584_v60 = vadd.f32 %v581_v58, %v562_v50 }
 0x59c   : > { %v616_v20 = vadd.f32 %v615_v15, %v614_v10 }
 0x59d   : > { %v589_v62 = vsel %vm588_vm2, %v584_v60, 0.0 }
 0x59e   : > { %592 = vadd.xlane.f32.xlu0 %v589_v62 }
 0x5a2   : > { %624 = vadd.xlane.f32.xlu0 %v623_v63 }
 0x62b   : > { %v593_v6 = vpop.xlane.xlu0 %592 }
 0x62c   : > { %v594_v7 = vrot.slane %v593_v6, 4 }
 0x62e   : > { %v595_v8 = vadd.f32 %v594_v7, %v593_v6 }
 0x62f   : > { %v625_v9 = vpop.xlane.xlu0 %624 }
 0x630   : > { %v596_v11 = vrot.slane %v595_v8, 2  ;;  %v626_v12 = vrot.slane %v625_v9, 4 }
 0x632   : > { %v627_v13 = vadd.f32 %v626_v12, %v625_v9  ;;  %v597_v14 = vadd.f32 %v596_v11, %v595_v8 }
 0x634   : > { %v628_v16 = vrot.slane %v627_v13, 2  ;;  %v598_v17 = vrot.slane %v597_v14, 1 }
 0x636   : > { %v629_v18 = vadd.f32 %v628_v16, %v627_v13  ;;  %v599_v19 = vadd.f32 %v598_v17, %v597_v14 }
 0x638   : > { %764 = vpush %v599_v19  ;;  %v630_v21 = vrot.slane %v629_v18, 1 }
 0x639   : > { %766 = vpush %v616_v20 }
 0x63a   : > { %v631_v22 = vadd.f32 %v630_v21, %v629_v18 }
 0x63c   : > { %768 = vpush %v631_v22 }
 0x669   : > { %s765_s24 = spop %764 }
 0x66a   : > { %s767_s25 = spop %766 }
 0x66b   : > { %s618_s26 = ssub.f32 %s765_s24, %s767_s25 }
 0x66d   : > { %s769_s27 = spop %768  ;;  %s619_s30 = smul.f32 0.125, %s618_s26 }
 0x66e   : > { %v633_v23 = vstv %s769_s27 }
 0x66f   : > { %835 = vrcp.f32 %v633_v23 }
 0x679   : > { %v836_v24 = vpop.eup %835 }
 0x67a   : > { %770 = vpush %v836_v24 }
 0x6ab   : > { %s771_s28 = spop %770 }
 0x6ac   : > { %v636_v25 = vstv %s771_s28 }
 0x6ad   : > { %v637_v26 = vmul.f32 %v636_v25, %v622_v61 }
 0x6af   : > { %v638_v27 = vadd.f32 0.01, %v637_v26 }
 0x6b1   : > { %837 = vlog2.f32 %v638_v27 }
 0x6bb   : > { %v838_v28 = vpop.eup %837 }
 0x6bc   : > { %v640_v29 = vmul.f32 0.6931472, %v838_v28 }
 0x6be   : > { %v641_v30 = vmul.f32 %v640_v29, %v637_v26 }
 0x6c0   : > { %v642_v31 = vsel %vm620_vm1, %v641_v30, 0.0 }
 0x6c1   : > { %v643_v3 = vsel %vm489_vm5, %v642_v31, 0.0 }
 0x6c2   : > { %644 = vadd.xlane.f32.xlu1 %v643_v3 }
 0x74f   : > { %v645_v32 = vpop.xlane.xlu1 %644 }
 0x750   : > { %v646_v33 = vrot.slane %v645_v32, 4 }
 0x752   : > { %v647_v34 = vadd.f32 %v646_v33, %v645_v32 }
 0x754   : > { %v648_v35 = vrot.slane %v647_v34, 2 }
 0x756   : > { %v649_v36 = vadd.f32 %v648_v35, %v647_v34 }
 0x758   : > { %v650_v37 = vrot.slane %v649_v36, 1 }
 0x75a   : > { %v651_v38 = vadd.f32 %v650_v37, %v649_v36 }
 0x75c   : > { %772 = vpush %v651_v38 }
 0x78d   : > { %s773_s29 = spop %772 }
 0x78e   : > { %s653_s3 = sadd.f32 2.0794415, %s773_s29 }
 0x790   : > { %s654_s4 = sadd.f32 %s653_s3, %s619_s30 }
 0x792   : > { %v655_v39 = vstv %s654_s4 }
 0x793   : > { %657 = vst.msk [vmem:[#allocation5] sm:$0x1] %vm656_vm3, %v655_v39 }
 0x794 PF: > { %p778_p6 = scmp.eq.s32.totalorder %s900_s10, 1  ;;  %s878_s5 = smov [#allocation5]  }
 0x795   : > { %s665_s6 = sshll.u32 %s878_s5, 4  ;;  %s666_s6 = int_to_ptr.vmem [resolvable:$true] %s665_s6 }
 0x796   : > { %s839_s7 = scalar_lea.vmem %s666_s6, 16  ;;  %s845_s8 = scalar_lea.vmem %s666_s6, 32 }
 0x797   : > { %p840_p7 = scmp.ne.s32.totalorder %s666_s6, %s839_s7  ;;  %p846_p10 = scmp.lt.s32.totalorder %s666_s6, %s666_s6 }
 0x798   : > { %p847_p11 = scmp.lt.s32.totalorder %s845_s8, %s839_s7 }
 0x799   : > { %p841_p8 = pnand %p840_p7, %p778_p6 }
 0x79a   : > { %p848_p12 = por %p847_p11, %p846_p10 }
 0x79b   : > { %p842_p9 = pneg %p841_p8 }
 0x79d   : > { %p849_p13 = pnand %p848_p12, %p842_p9 }
 0x79f   : > { %852 = shalt.err (!%p849_p13)
}
 0x7a0   : > { %s853_s13 = scalar_lea.hbm %s1057_s2, 16 }
 0x7a1   : > { %p854_p0 = scmp.ne.s32.totalorder %s1057_s2, %s853_s13  ;;  %p859_p3 = scmp.lt.u32.totalorder %s853_s13, %s1057_s2 }
 0x7a3   : > { %p855_p1 = pnand %p854_p0, %p778_p6 }
 0x7a5   : > { %p856_p2 = pneg %p855_p1 }
 0x7a7   : > { %p861_p4 = pnand %p859_p3, %p856_p2 }
 0x7a9   : > { %864 = shalt.err (!%p861_p4)
}
 0x7aa   : > { %775 = dma.vmem_to_hbm [thread:$0]  (%p778_p6), %s666_s6, 16, %s1057_s2, [#allocation6]  }
 0x7ab   : > { %870 = dma.done.wait (%p778_p6), [#allocation6], 16  }
 0x7ac   : > { %872 = vsyncadd (%p778_p6), [#allocation6], 4294967280 }
 0x7ad PF: > { %s13_s9 = sadd.s32 1, %s875_s9  }
 0x7ae   : > { %p10_p5 = scmp.ge.s32.totalorder %s13_s9, 4  }
 0x7b0   :  { %12 = sbr.rel (!%p10_p5) target bundleno = 1 (0x1), region = 63 }
 0x7b7   :  { %678 = vsyncpa [#allocation6], 1 }
 0x7b8   :  { %680 = vsyncpa [#allocation6 + $0x1], 1 }

</bundles_post_ra>
